<compile_context>
chip_gen: v7x
topology: tpu7x:2x2x1
jax: 0.10.0
libtpu: 0.0.40
codegen_flags: <defaults>
</compile_context>

<pallas_src>
import jax
import jax.numpy as jnp
from jax.experimental import pallas as pl
from jax.experimental.pallas import tpu as pltpu


def _delu_kernel(scale_ref, x_ref, o_ref):
    # scale_ref: SMEM scalar holding (n + 0.5).
    s = scale_ref[0]
    x = x_ref[...].astype(jnp.float32)
    e = jnp.exp(-x)                                   # single EUP transcendental
    silu = x * pl.reciprocal(1.0 + e, approx=True)    # x * sigmoid(x)   (x <= 0)
    pos = s * x + (1.0 - e)                           # (n+0.5)*x + |exp(-x)-1| (x > 0)
    o_ref[...] = jnp.where(x <= 0.0, silu, pos).astype(o_ref.dtype)


_LANES = 128
# ~2 MiB input tile; with output + double-buffering the working set is ~4x
# that, comfortably under the scoped-VMEM limit on v5e/v6e/v7x.
_TARGET_TILE_BYTES = 2 * 1024 * 1024


def delu(x: jax.Array, n: jax.Array) -> jax.Array:
    """Applies DELU elementwise. `n` is the scalar (shape (1,)) parameter."""
    orig_shape = x.shape
    dtype = x.dtype
    total = x.size

    # Widest lane-dense slab width that divides the element count (no padding
    # in the common path; NCHW with H*W a multiple of 128 always hits this).
    width = None
    for w in (8 * _LANES, 4 * _LANES, 2 * _LANES, _LANES):
        if total % w == 0:
            width = w
            break

    x_flat = x.reshape(-1)
    padded = 0
    if width is None:                      # rare fallback: pad up to 128 lanes
        width = _LANES
        padded = (-total) % _LANES
        x_flat = jnp.pad(x_flat, (0, padded))

    rows = x_flat.size // width
    x2d = x_flat.reshape(rows, width)

    itemsize = jnp.dtype(dtype).itemsize
    row_bytes = width * itemsize
    total_bytes = rows * row_bytes

    if total_bytes <= _TARGET_TILE_BYTES or rows <= 8:
        # Single full-array block (block == full dims waives the (8,128) rule).
        tile_rows = rows
        grid = (1,)
    else:
        # Multiple-of-8 row tile targeting ~2 MiB; the cdiv grid handles the
        # (masked) partial last block, so no explicit row padding is needed.
        tile_rows = max(8, (_TARGET_TILE_BYTES // row_bytes) // 8 * 8)
        tile_rows = min(tile_rows, (rows // 8) * 8)
        grid = (pl.cdiv(rows, tile_rows),)

    # Precompute (n + 0.5) once; shape (1,) f32 scalar living in SMEM.
    scale = n.astype(jnp.float32).reshape(-1)[:1] + 0.5

    out2d = pl.pallas_call(
        _delu_kernel,
        out_shape=jax.ShapeDtypeStruct((rows, width), dtype),
        grid=grid,
        in_specs=[
            pl.BlockSpec(memory_space=pltpu.SMEM),                 # (n + 0.5)
            pl.BlockSpec((tile_rows, width), lambda i: (i, 0)),    # x tile
        ],
        out_specs=pl.BlockSpec((tile_rows, width), lambda i: (i, 0)),
        compiler_params=pltpu.CompilerParams(
            dimension_semantics=("parallel",),
            vmem_limit_bytes=32 * 1024 * 1024,
        ),
    )(scale, x2d)

    out_flat = out2d.reshape(-1)
    if padded:
        out_flat = out_flat[:total]
    return out_flat.reshape(orig_shape)


def delu_reference(x, n):
    """Pure-JAX reference matching the PyTorch forward exactly."""
    xf = x.astype(jnp.float32)
    nf = n.astype(jnp.float32).reshape(-1)[0]
    silu = xf * jax.nn.sigmoid(xf)
    pos = (nf + 0.5) * xf + jnp.abs(jnp.exp(-xf) - 1.0)
    return jnp.where(xf <= 0.0, silu, pos).astype(x.dtype)


if __name__ == "__main__":
    key = jax.random.PRNGKey(0)
    x = jax.random.normal(key, (2, 4, 16, 16), dtype=jnp.float32)

    # Deterministic parameter matching DELU.__init__(n=1.0).
    n_param = jnp.array([1.0], dtype=jnp.float32)

    out = jax.block_until_ready(delu(x, n_param))
    ref = delu_reference(x, n_param)

    assert out.shape == x.shape and out.dtype == x.dtype
    # Tolerance allows for the approx (EUP) reciprocal in the SiLU branch.
    assert jnp.allclose(out, ref, atol=2e-3, rtol=2e-3), "mismatch vs reference"

    print("KERNEL_OK")
</pallas_src>

<mosaic_0001>
module attributes {stable_mosaic.version = 11 : i64} {
  func.func @_delu_kernel(%arg0: i32, %arg1: memref<1xf32, #tpu.memory_space<smem>>, %arg2: memref<2x1024xf32, #tpu.memory_space<vmem>>, %arg3: memref<2x1024xf32, #tpu.memory_space<vmem>>) attributes {dimension_semantics = [#tpu.dimension_semantics<parallel>], iteration_bounds = array<i64: 1>, scalar_prefetch = 0 : i64, scratch_operands = 0 : i64, tpu.core_type = #tpu.core_type<tc>, window_params = [{transform_indices = @transform_0, window_bounds = array<i64: 1>}, {transform_indices = @transform_1, window_bounds = array<i64: 2, 1024>}, {transform_indices = @transform_2, window_bounds = array<i64: 2, 1024>}]} {
    %c0 = arith.constant 0 : index
    %0 = memref.load %arg1[%c0] : memref<1xf32, #tpu.memory_space<smem>>
    %c0_0 = arith.constant 0 : index
    %c0_1 = arith.constant 0 : index
    %1 = vector.load %arg2[%c0_0, %c0_1] : memref<2x1024xf32, #tpu.memory_space<vmem>>, vector<2x1024xf32>
    %cst = arith.constant 0.000000e+00 : f32
    %2 = vector.broadcast %cst : f32 to vector<2x1024xf32>
    %3 = arith.subf %2, %1 : vector<2x1024xf32>
    %4 = math.exp %3 : vector<2x1024xf32>
    %cst_2 = arith.constant 1.000000e+00 : f32
    %5 = vector.broadcast %cst_2 : f32 to vector<2x1024xf32>
    %6 = arith.addf %5, %4 : vector<2x1024xf32>
    %7 = tpu.reciprocal %6 {approx = true} : vector<2x1024xf32> -> vector<2x1024xf32>
    %8 = arith.mulf %1, %7 : vector<2x1024xf32>
    %9 = vector.broadcast %0 : f32 to vector<2x1024xf32>
    %10 = arith.mulf %9, %1 : vector<2x1024xf32>
    %cst_3 = arith.constant 1.000000e+00 : f32
    %11 = vector.broadcast %cst_3 : f32 to vector<2x1024xf32>
    %12 = arith.subf %11, %4 : vector<2x1024xf32>
    %13 = arith.addf %10, %12 : vector<2x1024xf32>
    %cst_4 = arith.constant 0.000000e+00 : f32
    %14 = vector.broadcast %cst_4 : f32 to vector<2x1024xf32>
    %15 = arith.cmpf ole, %1, %14 : vector<2x1024xf32>
    %16 = arith.select %15, %8, %13 : vector<2x1024xi1>, vector<2x1024xf32>
    %c0_5 = arith.constant 0 : index
    %c0_6 = arith.constant 0 : index
    %17 = vector.load %arg3[%c0_5, %c0_6] : memref<2x1024xf32, #tpu.memory_space<vmem>>, vector<2x1024xf32>
    tpu.vector_store %arg3[%c0_5, %c0_6], %16 {strides = array<i32>} : memref<2x1024xf32, #tpu.memory_space<vmem>>, vector<2x1024xf32>,
    return
  }
  func.func @transform_0(%arg0: i32) -> i32 {
    %c0_i32 = arith.constant 0 : i32
    %c0_i32_0 = arith.constant 0 : i32
    return %c0_i32 : i32
  }
  func.func @transform_1(%arg0: i32) -> (i32, i32) {
    %c0_i32 = arith.constant 0 : i32
    %c0_i32_0 = arith.constant 0 : i32
    return %arg0, %c0_i32 : i32, i32
  }
  func.func @transform_2(%arg0: i32) -> (i32, i32) {
    %c0_i32 = arith.constant 0 : i32
    %c0_i32_0 = arith.constant 0 : i32
    return %arg0, %c0_i32 : i32, i32
  }
}

</mosaic_0001>

<bundles_post_ra>
// kernel: tpu_custom_call.1
= control target key start
LH: loop header
LB: loop body
LE: loop exit
PB: predicated region body
PF: predicated region fallthrough
CT: control target
= control target key end

     0   :  { %8 = vsyncpa [#allocation4], 0  ;;  %s170_s0 = inlined_call_operand.<no memory space> [shape: f32[1], index: 0, kind: input, shape index: {}]   ;;  %s171_s1 = inlined_call_operand.hbm [shape: f32[2,1024], index: 1, kind: input, shape index: {}]   ;;  %s172_s2 = inlined_call_operand.hbm [shape: f32[2,1024], index: 2, kind: output, shape index: {}]  }
   0x1   :  { %9 = vsyncpa [#allocation5], 0  ;;  %s126_s9 = smov [#allocation3]   ;;  %s78_s13 = scalar_lea.hbm %s171_s1, 256 }
   0x2   :  { %s18_s10 = sshll.u32 %s126_s9, 4  ;;  %p79_p0 = scmp.ne.s32.totalorder %s171_s1, %s78_s13  ;;  %s19_s10 = int_to_ptr.vmem [resolvable:$true] %s18_s10 }
   0x3   :  { %p82_p1 = scmp.lt.u32.totalorder %s78_s13, %s171_s1 }
   0x5   :  { %p84_p2 = pnand %p82_p1, %p79_p0 }
   0x7   :  { %87 = shalt.err (!%p84_p2)
}
   0x8   :  { %s88_s18 = scalar_lea.vmem %s19_s10, 256  ;;  %p93_p4 = scmp.lt.s32.totalorder %s19_s10, %s19_s10 }
   0x9   :  { %p89_p3 = scmp.ne.s32.totalorder %s19_s10, %s88_s18  ;;  %p94_p5 = scmp.lt.s32.totalorder %s88_s18, %s88_s18 }
   0xb   :  { %p95_p6 = por %p94_p5, %p93_p4 }
   0xd   :  { %p96_p7 = pnand %p95_p6, %p89_p3 }
   0xf   :  { %99 = shalt.err (!%p96_p7)
}
  0x10   :  { %21 = dma.hbm_to_vmem [thread:$0]  %s171_s1, 256, %s19_s10, [#allocation4]  }
  0x11   :  { %122 = dma.done.wait [#allocation4], 256  }
  0x12   :  { %123 = vsyncadd [#allocation4], 4294967040  ;;  %v26_v0 = vld [vmem:[#allocation3] sm:$0xff]  ;;  %v27_v1 = vld [vmem:[#allocation3 + $0x8] sm:$0xff]  ;;  %v40_v10 = vstv %s170_s0  ;;  %s127_s1 = smov [#allocation6]  }
  0x13   :  { %v28_v2 = vsub.f32 0.0, %v26_v0  ;;  %v29_v3 = vsub.f32 0.0, %v27_v1  ;;  %v41_v11 = vmul.f32 %v40_v10, %v26_v0  ;;  %v42_v13 = vmul.f32 %v40_v10, %v27_v1  ;;  %s59_s23 = sshll.u32 %s127_s1, 4  ;;  %s60_s23 = int_to_ptr.vmem [resolvable:$true] %s59_s23 }
  0x14   :  { %vm47_vm0 = vcmp.le.f32.partialorder %v26_v0, 0.0  ;;  %vm48_vm1 = vcmp.le.f32.partialorder %v27_v1, 0.0  ;;  %s100_s0 = scalar_lea.vmem %s60_s23, 256  ;;  %p105_p9 = scmp.lt.s32.totalorder %s60_s23, %s60_s23 }
  0x15   :  { %v30_v4 = vmul.f32 1.442695, %v28_v2  ;;  %v32_v5 = vmul.f32 1.442695, %v29_v3  ;;  %p101_p8 = scmp.ne.s32.totalorder %s60_s23, %s100_s0  ;;  %p106_p10 = scmp.lt.s32.totalorder %s100_s0, %s100_s0 }
  0x17   :  { %70 = vpow2.f32 %v30_v4  ;;  %p107_p11 = por %p106_p10, %p105_p9 }
  0x18   :  { %72 = vpow2.f32 %v32_v5 }
  0x19   :  { %p108_p12 = pnand %p107_p11, %p101_p8 }
  0x21   :  { %v71_v6 = vpop.eup %70 }
  0x22   :  { %v73_v7 = vpop.eup %72  ;;  %v34_v8 = vadd.f32 1.0, %v71_v6  ;;  %v43_v12 = vsub.f32 1.0, %v71_v6 }
  0x23   :  { %v35_v9 = vadd.f32 1.0, %v73_v7  ;;  %v44_v14 = vsub.f32 1.0, %v73_v7 }
  0x24   :  { %74 = vrcp.f32 %v34_v8  ;;  %v45_v15 = vadd.f32 %v43_v12, %v41_v11 }
  0x25   :  { %76 = vrcp.f32 %v35_v9  ;;  %v46_v17 = vadd.f32 %v44_v14, %v42_v13 }
  0x2e   :  { %v75_v16 = vpop.eup %74 }
  0x2f   :  { %v77_v18 = vpop.eup %76  ;;  %v38_v19 = vmul.f32 %v75_v16, %v26_v0 }
  0x30   :  { %v39_v20 = vmul.f32 %v77_v18, %v27_v1 }
  0x31   :  { %v49_v21 = vsel %vm47_vm0, %v38_v19, %v45_v15 }
  0x32   :  { %51 = vst [vmem:[#allocation6] sm:$0xff] %v49_v21  ;;  %v50_v22 = vsel %vm48_vm1, %v39_v20, %v46_v17 }
  0x33   :  { %52 = vst [vmem:[#allocation6 + $0x8] sm:$0xff] %v50_v22 }
  0x34   :  { %111 = shalt.err (!%p108_p12)
}
  0x35   :  { %s112_s26 = scalar_lea.hbm %s172_s2, 256 }
  0x36   :  { %p113_p13 = scmp.ne.s32.totalorder %s172_s2, %s112_s26  ;;  %p116_p0 = scmp.lt.u32.totalorder %s112_s26, %s172_s2 }
  0x38   :  { %p118_p1 = pnand %p116_p0, %p113_p13 }
  0x3a   :  { %121 = shalt.err (!%p118_p1)
}
  0x3b   :  { %62 = dma.vmem_to_hbm [thread:$0]  %s60_s23, 256, %s172_s2, [#allocation5]  }
  0x3c   :  { %124 = dma.done.wait [#allocation5], 256  }
  0x3d   :  { %125 = vsyncadd [#allocation5], 4294967040 }
  0x3e   :  { %66 = vsyncpa [#allocation4], 1 }
  0x3f   :  { %67 = vsyncpa [#allocation5], 1 }

</bundles_post_ra>
